<compile_context>
chip_gen: v5e
topology: v5e:2x2
jax: 0.10.0
libtpu: 0.0.40
codegen_flags: <defaults>
</compile_context>

<pallas_src>
import functools

import jax
import jax.numpy as jnp
from jax.experimental import pallas as pl
from jax.experimental.pallas import tpu as pltpu


def _round_up(x, m):
    return (x + m - 1) // m * m


# ----------------------------------------------------------------------------
# Pass 1: tiled matmul (im2col patches @ weights) with f32 accumulation and
#         per-channel sum / sum-of-squares accumulated across M tiles.
#         grid = (J: Cout tiles [parallel], I: M tiles [arbitrary],
#                 K: contraction tiles [arbitrary, last])
# ----------------------------------------------------------------------------
def _conv_stats_kernel(x_ref, w_ref, y_ref, sum_ref, ssq_ref, acc_ref):
    mi = pl.program_id(1)
    ki = pl.program_id(2)
    nk = pl.num_programs(2)

    @pl.when(ki == 0)
    def _():
        acc_ref[...] = jnp.zeros_like(acc_ref)

    acc_ref[...] += jnp.dot(
        x_ref[...], w_ref[...], preferred_element_type=jnp.float32
    )

    # stats blocks are resident across (mi, ki): zero them on first touch
    @pl.when(jnp.logical_and(mi == 0, ki == nk - 1))
    def _():
        sum_ref[...] = jnp.zeros_like(sum_ref)
        ssq_ref[...] = jnp.zeros_like(ssq_ref)

    @pl.when(ki == nk - 1)
    def _():
        acc = acc_ref[...]
        y_ref[...] = acc
        sum_ref[...] += jnp.sum(acc, axis=0, keepdims=True)
        ssq_ref[...] += jnp.sum(acc * acc, axis=0, keepdims=True)


# ----------------------------------------------------------------------------
# Pass 2: BN normalize (training-mode batch statistics) + gamma/beta + ReLU,
#         tiled over (Cout tiles, M tiles) -- both axes parallel.
# ----------------------------------------------------------------------------
def _bn_relu_kernel(y_ref, sum_ref, ssq_ref, gamma_ref, beta_ref, o_ref,
                    *, inv_m, eps, has_bn, has_relu):
    y = y_ref[...]
    if has_bn:
        mean = sum_ref[...] * inv_m
        var = jnp.maximum(ssq_ref[...] * inv_m - mean * mean, 0.0)
        y = (y - mean) * jax.lax.rsqrt(var + eps) * gamma_ref[...] + beta_ref[...]
    if has_relu:
        y = jnp.maximum(y, 0.0)
    o_ref[...] = y.astype(o_ref.dtype)


# ----------------------------------------------------------------------------
# Plain-JAX glue: im2col patch extraction (bf16) + padding + the two
# pallas_calls.
# ----------------------------------------------------------------------------
def _extract_patches(x_nhwc, kh, kw, stride, pad, dilation):
    N, H, W, C = x_nhwc.shape
    eff_kh = (kh - 1) * dilation + 1
    eff_kw = (kw - 1) * dilation + 1
    Ho = (H + 2 * pad - eff_kh) // stride + 1
    Wo = (W + 2 * pad - eff_kw) // stride + 1
    xp = jnp.pad(x_nhwc, ((0, 0), (pad, pad), (pad, pad), (0, 0)))
    cols = []
    for ky in range(kh):
        for kx in range(kw):
            oy, ox = ky * dilation, kx * dilation
            cols.append(
                xp[:, oy: oy + stride * (Ho - 1) + 1: stride,
                      ox: ox + stride * (Wo - 1) + 1: stride, :]
            )
    patches = jnp.stack(cols, axis=-2)                 # (N, Ho, Wo, kh*kw, C)
    return patches.reshape(N * Ho * Wo, kh * kw * C), Ho, Wo


@functools.partial(
    jax.jit,
    static_argnames=("stride", "pad", "dilation", "has_bn", "has_relu",
                     "eps", "block_m", "block_k", "block_n"),
)
def conv_bn_relu_forward(x_nchw, w, gamma, beta, *, stride, pad, dilation=1,
                         has_bn=True, has_relu=True, eps=1e-5,
                         block_m=512, block_k=128, block_n=128):
    """ConvBnRelu forward. x: NCHW f32, w: (kh, kw, cin, cout). Returns NCHW."""
    kh, kw, cin, cout = w.shape
    N = x_nchw.shape[0]

    x_nhwc = jnp.transpose(x_nchw, (0, 2, 3, 1)).astype(jnp.bfloat16)
    p2d, Ho, Wo = _extract_patches(x_nhwc, kh, kw, stride, pad, dilation)
    M, K = p2d.shape

    # tile sizes / zero padding (numerically inert, see header comment)
    tm = _round_up(min(block_m, M), 8)
    tk = block_k
    tn = block_n
    Mpad = _round_up(M, tm)
    Kpad = _round_up(K, tk)
    Cp = _round_up(cout, tn)

    xp = jnp.pad(p2d, ((0, Mpad - M), (0, Kpad - K)))
    w2d = jnp.pad(w.reshape(K, cout).astype(jnp.bfloat16),
                  ((0, Kpad - K), (0, Cp - cout)))
    g = jnp.pad(gamma, (0, Cp - cout)).reshape(1, Cp).astype(jnp.float32)
    b = jnp.pad(beta, (0, Cp - cout)).reshape(1, Cp).astype(jnp.float32)

    J, MI, KI = Cp // tn, Mpad // tm, Kpad // tk

    # ---- pass 1: conv (matmul) + per-channel sum / sumsq -------------------
    y, s, ssq = pl.pallas_call(
        _conv_stats_kernel,
        grid=(J, MI, KI),
        in_specs=[
            pl.BlockSpec((tm, tk), lambda j, i, k: (i, k)),
            pl.BlockSpec((tk, tn), lambda j, i, k: (k, j)),
        ],
        out_specs=[
            pl.BlockSpec((tm, tn), lambda j, i, k: (i, j)),
            pl.BlockSpec((1, tn), lambda j, i, k: (0, j)),
            pl.BlockSpec((1, tn), lambda j, i, k: (0, j)),
        ],
        out_shape=[
            jax.ShapeDtypeStruct((Mpad, Cp), jnp.float32),
            jax.ShapeDtypeStruct((1, Cp), jnp.float32),
            jax.ShapeDtypeStruct((1, Cp), jnp.float32),
        ],
        scratch_shapes=[pltpu.VMEM((tm, tn), jnp.float32)],
        compiler_params=pltpu.CompilerParams(
            dimension_semantics=("parallel", "arbitrary", "arbitrary")),
    )(xp, w2d)

    # ---- pass 2: normalize + affine + ReLU ---------------------------------
    out = pl.pallas_call(
        functools.partial(_bn_relu_kernel, inv_m=1.0 / M, eps=eps,
                          has_bn=has_bn, has_relu=has_relu),
        grid=(J, MI),
        in_specs=[
            pl.BlockSpec((tm, tn), lambda j, i: (i, j)),
            pl.BlockSpec((1, tn), lambda j, i: (0, j)),
            pl.BlockSpec((1, tn), lambda j, i: (0, j)),
            pl.BlockSpec((1, tn), lambda j, i: (0, j)),
            pl.BlockSpec((1, tn), lambda j, i: (0, j)),
        ],
        out_specs=pl.BlockSpec((tm, tn), lambda j, i: (i, j)),
        out_shape=jax.ShapeDtypeStruct((Mpad, Cp), jnp.float32),
        compiler_params=pltpu.CompilerParams(
            dimension_semantics=("parallel", "parallel")),
    )(y, s, ssq, g, b)

    out = out[:M, :cout].reshape(N, Ho, Wo, cout)
    return jnp.transpose(out, (0, 3, 1, 2))            # back to NCHW


# ----------------------------------------------------------------------------
# Module-style wrapper mirroring ConvBnRelu
# ----------------------------------------------------------------------------
class ConvBnReluPallas:
    def __init__(self, key, in_planes, out_planes, ksize, stride=1, pad=0,
                 dilation=1, has_bn=True, bn_eps=1e-5, has_relu=True):
        fan_in = in_planes * ksize * ksize
        self.w = jax.random.normal(
            key, (ksize, ksize, in_planes, out_planes), jnp.float32
        ) * jnp.sqrt(2.0 / fan_in)
        self.gamma = jnp.ones((out_planes,), jnp.float32)   # fresh BN: gamma=1
        self.beta = jnp.zeros((out_planes,), jnp.float32)   # fresh BN: beta=0
        self.stride, self.pad, self.dilation = stride, pad, dilation
        self.has_bn, self.eps, self.has_relu = has_bn, bn_eps, has_relu

    def __call__(self, x_nchw, *, block_m=512):
        return conv_bn_relu_forward(
            x_nchw, self.w, self.gamma, self.beta,
            stride=self.stride, pad=self.pad, dilation=self.dilation,
            has_bn=self.has_bn, has_relu=self.has_relu, eps=self.eps,
            block_m=block_m)


# ----------------------------------------------------------------------------
# Pure-JAX reference (f32) for correctness checking
# ----------------------------------------------------------------------------
def _reference(x_nchw, w, gamma, beta, *, stride, pad, dilation,
               has_bn, has_relu, eps):
    x = jnp.transpose(x_nchw, (0, 2, 3, 1))
    y = jax.lax.conv_general_dilated(
        x, w, window_strides=(stride, stride),
        padding=((pad, pad), (pad, pad)),
        rhs_dilation=(dilation, dilation),
        dimension_numbers=("NHWC", "HWIO", "NHWC"))
    if has_bn:
        mean = jnp.mean(y, axis=(0, 1, 2), keepdims=True)
        var = jnp.mean(jnp.square(y - mean), axis=(0, 1, 2), keepdims=True)
        y = (y - mean) * jax.lax.rsqrt(var + eps) * gamma + beta
    if has_relu:
        y = jnp.maximum(y, 0.0)
    return jnp.transpose(y, (0, 3, 1, 2))


# ----------------------------------------------------------------------------
if __name__ == "__main__":
    key = jax.random.PRNGKey(0)
    k_w, k_x = jax.random.split(key)

    x = jax.random.normal(k_x, (2, 4, 16, 16), jnp.float32)   # NCHW like PyTorch

    # ConvBnRelu(4, 16, ksize=3, stride=1, pad=1, has_bn=True, has_relu=True)
    mod = ConvBnReluPallas(k_w, 4, 16, ksize=3, stride=1, pad=1)
    out = jax.block_until_ready(mod(x, block_m=128))          # 4 M-tiles
    assert out.shape == (2, 16, 16, 16), out.shape
    assert bool(jnp.all(jnp.isfinite(out)))
    ref = _reference(x, mod.w, mod.gamma, mod.beta, stride=1, pad=1, dilation=1,
                     has_bn=True, has_relu=True, eps=mod.eps)
    err = float(jnp.max(jnp.abs(out - ref)))
    assert err < 1e-1, f"max abs err {err}"

    # second config: stride=2, no ReLU (exercises flags + multi-tile BN stats)
    mod2 = ConvBnReluPallas(k_w, 4, 8, ksize=3, stride=2, pad=1, has_relu=False)
    out2 = jax.block_until_ready(mod2(x, block_m=64))         # 2 M-tiles
    assert out2.shape == (2, 8, 8, 8), out2.shape
    ref2 = _reference(x, mod2.w, mod2.gamma, mod2.beta, stride=2, pad=1,
                      dilation=1, has_bn=True, has_relu=False, eps=mod2.eps)
    err2 = float(jnp.max(jnp.abs(out2 - ref2)))
    assert err2 < 1e-1, f"max abs err {err2}"

    print("KERNEL_OK")
</pallas_src>

<mosaic_0001>
module attributes {stable_mosaic.version = 11 : i64} {
  func.func @_conv_stats_kernel(%arg0: i32, %arg1: i32, %arg2: i32, %arg3: memref<128x128xbf16, #tpu.memory_space<vmem>>, %arg4: memref<128x128xbf16, #tpu.memory_space<vmem>>, %arg5: memref<128x128xf32, #tpu.memory_space<vmem>>, %arg6: memref<1x128xf32, #tpu.memory_space<vmem>>, %arg7: memref<1x128xf32, #tpu.memory_space<vmem>>, %arg8: memref<128x128xf32, #tpu.memory_space<vmem>>) attributes {dimension_semantics = [#tpu.dimension_semantics<parallel>, #tpu.dimension_semantics<arbitrary>, #tpu.dimension_semantics<arbitrary>], iteration_bounds = array<i64: 1, 4, 1>, scalar_prefetch = 0 : i64, scratch_operands = 1 : i64, tpu.core_type = #tpu.core_type<tc>, window_params = [{transform_indices = @transform_0, window_bounds = array<i64: 128, 128>}, {transform_indices = @transform_1, window_bounds = array<i64: 128, 128>}, {transform_indices = @transform_2, window_bounds = array<i64: 128, 128>}, {transform_indices = @transform_3, window_bounds = array<i64: 1, 128>}, {transform_indices = @transform_4, window_bounds = array<i64: 1, 128>}]} {
    %c0_i32 = arith.constant 0 : i32
    %0 = arith.cmpi eq, %arg2, %c0_i32 : i32
    %1 = arith.extui %0 : i1 to i32
    %c0_i32_0 = arith.constant 0 : i32
    %2 = arith.cmpi ne, %1, %c0_i32_0 : i32
    scf.if %2 {
      %cst_13 = arith.constant 0.000000e+00 : f32
      %17 = vector.broadcast %cst_13 : f32 to vector<128x128xf32>
      %c0_14 = arith.constant 0 : index
      %c0_15 = arith.constant 0 : index
      %18 = vector.load %arg8[%c0_14, %c0_15] : memref<128x128xf32, #tpu.memory_space<vmem>>, vector<128x128xf32>
      tpu.vector_store %arg8[%c0_14, %c0_15], %17 {strides = array<i32>} : memref<128x128xf32, #tpu.memory_space<vmem>>, vector<128x128xf32>,
    } else {
    }
    %c0 = arith.constant 0 : index
    %c0_1 = arith.constant 0 : index
    %3 = vector.load %arg8[%c0, %c0_1] : memref<128x128xf32, #tpu.memory_space<vmem>>, vector<128x128xf32>
    %c0_2 = arith.constant 0 : index
    %c0_3 = arith.constant 0 : index
    %4 = vector.load %arg3[%c0_2, %c0_3] : memref<128x128xbf16, #tpu.memory_space<vmem>>, vector<128x128xbf16>
    %c0_4 = arith.constant 0 : index
    %c0_5 = arith.constant 0 : index
    %5 = vector.load %arg4[%c0_4, %c0_5] : memref<128x128xbf16, #tpu.memory_space<vmem>>, vector<128x128xbf16>
    %cst = arith.constant dense<0.000000e+00> : vector<128x128xf32>
    %6 = tpu.matmul %4, %5, %cst {dimension_numbers = #tpu.dot_dimension_numbers<[1], [0], [0], [1], [0, 0, 1, 1], [], []>} : vector<128x128xbf16>, vector<128x128xbf16>, vector<128x128xf32> -> vector<128x128xf32>
    %7 = arith.addf %3, %6 : vector<128x128xf32>
    %c0_6 = arith.constant 0 : index
    %c0_7 = arith.constant 0 : index
    %8 = vector.load %arg8[%c0_6, %c0_7] : memref<128x128xf32, #tpu.memory_space<vmem>>, vector<128x128xf32>
    tpu.vector_store %arg8[%c0_6, %c0_7], %7 {strides = array<i32>} : memref<128x128xf32, #tpu.memory_space<vmem>>, vector<128x128xf32>,
    %c0_i32_8 = arith.constant 0 : i32
    %9 = arith.cmpi eq, %arg1, %c0_i32_8 : i32
    %c0_i32_9 = arith.constant 0 : i32
    %10 = arith.cmpi eq, %arg2, %c0_i32_9 : i32
    %11 = arith.andi %9, %10 : i1
    %12 = arith.extui %11 : i1 to i32
    %c0_i32_10 = arith.constant 0 : i32
    %13 = arith.cmpi ne, %12, %c0_i32_10 : i32
    scf.if %13 {
      %cst_13 = arith.constant 0.000000e+00 : f32
      %17 = vector.broadcast %cst_13 : f32 to vector<1x128xf32>
      %c0_14 = arith.constant 0 : index
      %c0_15 = arith.constant 0 : index
      %18 = vector.load %arg6[%c0_14, %c0_15] : memref<1x128xf32, #tpu.memory_space<vmem>>, vector<1x128xf32>
      tpu.vector_store %arg6[%c0_14, %c0_15], %17 {strides = array<i32>} : memref<1x128xf32, #tpu.memory_space<vmem>>, vector<1x128xf32>,
      %cst_16 = arith.constant 0.000000e+00 : f32
      %19 = vector.broadcast %cst_16 : f32 to vector<1x128xf32>
      %c0_17 = arith.constant 0 : index
      %c0_18 = arith.constant 0 : index
      %20 = vector.load %arg7[%c0_17, %c0_18] : memref<1x128xf32, #tpu.memory_space<vmem>>, vector<1x128xf32>
      tpu.vector_store %arg7[%c0_17, %c0_18], %19 {strides = array<i32>} : memref<1x128xf32, #tpu.memory_space<vmem>>, vector<1x128xf32>,
    } else {
    }
    %c0_i32_11 = arith.constant 0 : i32
    %14 = arith.cmpi eq, %arg2, %c0_i32_11 : i32
    %15 = arith.extui %14 : i1 to i32
    %c0_i32_12 = arith.constant 0 : i32
    %16 = arith.cmpi ne, %15, %c0_i32_12 : i32
    scf.if %16 {
      %c0_13 = arith.constant 0 : index
      %c0_14 = arith.constant 0 : index
      %17 = vector.load %arg8[%c0_13, %c0_14] : memref<128x128xf32, #tpu.memory_space<vmem>>, vector<128x128xf32>
      %c0_15 = arith.constant 0 : index
      %c0_16 = arith.constant 0 : index
      %18 = vector.load %arg5[%c0_15, %c0_16] : memref<128x128xf32, #tpu.memory_space<vmem>>, vector<128x128xf32>
      tpu.vector_store %arg5[%c0_15, %c0_16], %17 {strides = array<i32>} : memref<128x128xf32, #tpu.memory_space<vmem>>, vector<128x128xf32>,
      %c0_17 = arith.constant 0 : index
      %c0_18 = arith.constant 0 : index
      %19 = vector.load %arg6[%c0_17, %c0_18] : memref<1x128xf32, #tpu.memory_space<vmem>>, vector<1x128xf32>
      %cst_19 = arith.constant dense<0.000000e+00> : vector<128xf32>
      %20 = vector.multi_reduction <add>, %17, %cst_19 [0] : vector<128x128xf32> to vector<128xf32>
      %21 = vector.shape_cast %20 : vector<128xf32> to vector<1x128xf32>
      %22 = arith.addf %19, %21 : vector<1x128xf32>
      %c0_20 = arith.constant 0 : index
      %c0_21 = arith.constant 0 : index
      %23 = vector.load %arg6[%c0_20, %c0_21] : memref<1x128xf32, #tpu.memory_space<vmem>>, vector<1x128xf32>
      tpu.vector_store %arg6[%c0_20, %c0_21], %22 {strides = array<i32>} : memref<1x128xf32, #tpu.memory_space<vmem>>, vector<1x128xf32>,
      %c0_22 = arith.constant 0 : index
      %c0_23 = arith.constant 0 : index
      %24 = vector.load %arg7[%c0_22, %c0_23] : memref<1x128xf32, #tpu.memory_space<vmem>>, vector<1x128xf32>
      %25 = arith.mulf %17, %17 : vector<128x128xf32>
      %cst_24 = arith.constant dense<0.000000e+00> : vector<128xf32>
      %26 = vector.multi_reduction <add>, %25, %cst_24 [0] : vector<128x128xf32> to vector<128xf32>
      %27 = vector.shape_cast %26 : vector<128xf32> to vector<1x128xf32>
      %28 = arith.addf %24, %27 : vector<1x128xf32>
      %c0_25 = arith.constant 0 : index
      %c0_26 = arith.constant 0 : index
      %29 = vector.load %arg7[%c0_25, %c0_26] : memref<1x128xf32, #tpu.memory_space<vmem>>, vector<1x128xf32>
      tpu.vector_store %arg7[%c0_25, %c0_26], %28 {strides = array<i32>} : memref<1x128xf32, #tpu.memory_space<vmem>>, vector<1x128xf32>,
    } else {
    }
    return
  }
  func.func @transform_0(%arg0: i32, %arg1: i32, %arg2: i32) -> (i32, i32) {
    %c0_i32 = arith.constant 0 : i32
    return %arg1, %arg2 : i32, i32
  }
  func.func @transform_1(%arg0: i32, %arg1: i32, %arg2: i32) -> (i32, i32) {
    %c0_i32 = arith.constant 0 : i32
    return %arg2, %arg0 : i32, i32
  }
  func.func @transform_2(%arg0: i32, %arg1: i32, %arg2: i32) -> (i32, i32) {
    %c0_i32 = arith.constant 0 : i32
    return %arg1, %arg0 : i32, i32
  }
  func.func @transform_3(%arg0: i32, %arg1: i32, %arg2: i32) -> (i32, i32) {
    %c0_i32 = arith.constant 0 : i32
    %c0_i32_0 = arith.constant 0 : i32
    return %c0_i32, %arg0 : i32, i32
  }
  func.func @transform_4(%arg0: i32, %arg1: i32, %arg2: i32) -> (i32, i32) {
    %c0_i32 = arith.constant 0 : i32
    %c0_i32_0 = arith.constant 0 : i32
    return %c0_i32, %arg0 : i32, i32
  }
}

module attributes {stable_mosaic.version = 11 : i64} {
  func.func @_bn_relu_kernel(%arg0: i32, %arg1: i32, %arg2: memref<128x128xf32, #tpu.memory_space<vmem>>, %arg3: memref<1x128xf32, #tpu.memory_space<vmem>>, %arg4: memref<1x128xf32, #tpu.memory_space<vmem>>, %arg5: memref<1x128xf32, #tpu.memory_space<vmem>>, %arg6: memref<1x128xf32, #tpu.memory_space<vmem>>, %arg7: memref<128x128xf32, #tpu.memory_space<vmem>>) attributes {dimension_semantics = [#tpu.dimension_semantics<parallel>, #tpu.dimension_semantics<parallel>], iteration_bounds = array<i64: 1, 4>, scalar_prefetch = 0 : i64, scratch_operands = 0 : i64, tpu.core_type = #tpu.core_type<tc>, window_params = [{transform_indices = @transform_0, window_bounds = array<i64: 128, 128>}, {transform_indices = @transform_1, window_bounds = array<i64: 1, 128>}, {transform_indices = @transform_2, window_bounds = array<i64: 1, 128>}, {transform_indices = @transform_3, window_bounds = array<i64: 1, 128>}, {transform_indices = @transform_4, window_bounds = array<i64: 1, 128>}, {transform_indices = @transform_5, window_bounds = array<i64: 128, 128>}]} {
    %c0 = arith.constant 0 : index
    %c0_0 = arith.constant 0 : index
    %0 = vector.load %arg2[%c0, %c0_0] : memref<128x128xf32, #tpu.memory_space<vmem>>, vector<128x128xf32>
    %c0_1 = arith.constant 0 : index
    %c0_2 = arith.constant 0 : index
    %1 = vector.load %arg3[%c0_1, %c0_2] : memref<1x128xf32, #tpu.memory_space<vmem>>, vector<1x128xf32>
    %cst = arith.constant 0.001953125 : f32
    %2 = vector.broadcast %cst : f32 to vector<1x128xf32>
    %3 = arith.mulf %1, %2 : vector<1x128xf32>
    %c0_3 = arith.constant 0 : index
    %c0_4 = arith.constant 0 : index
    %4 = vector.load %arg4[%c0_3, %c0_4] : memref<1x128xf32, #tpu.memory_space<vmem>>, vector<1x128xf32>
    %cst_5 = arith.constant 0.001953125 : f32
    %5 = vector.broadcast %cst_5 : f32 to vector<1x128xf32>
    %6 = arith.mulf %4, %5 : vector<1x128xf32>
    %7 = arith.mulf %3, %3 : vector<1x128xf32>
    %8 = arith.subf %6, %7 : vector<1x128xf32>
    %cst_6 = arith.constant 0.000000e+00 : f32
    %9 = vector.broadcast %cst_6 : f32 to vector<1x128xf32>
    %10 = arith.maximumf %8, %9 : vector<1x128xf32>
    %11 = vector.broadcast %3 : vector<1x128xf32> to vector<128x128xf32>
    %12 = arith.subf %0, %11 : vector<128x128xf32>
    %cst_7 = arith.constant 9.99999974E-6 : f32
    %13 = vector.broadcast %cst_7 : f32 to vector<1x128xf32>
    %14 = arith.addf %10, %13 : vector<1x128xf32>
    %15 = math.rsqrt %14 : vector<1x128xf32>
    %16 = vector.broadcast %15 : vector<1x128xf32> to vector<128x128xf32>
    %17 = arith.mulf %12, %16 : vector<128x128xf32>
    %c0_8 = arith.constant 0 : index
    %c0_9 = arith.constant 0 : index
    %18 = vector.load %arg5[%c0_8, %c0_9] : memref<1x128xf32, #tpu.memory_space<vmem>>, vector<1x128xf32>
    %19 = vector.broadcast %18 : vector<1x128xf32> to vector<128x128xf32>
    %20 = arith.mulf %17, %19 : vector<128x128xf32>
    %c0_10 = arith.constant 0 : index
    %c0_11 = arith.constant 0 : index
    %21 = vector.load %arg6[%c0_10, %c0_11] : memref<1x128xf32, #tpu.memory_space<vmem>>, vector<1x128xf32>
    %22 = vector.broadcast %21 : vector<1x128xf32> to vector<128x128xf32>
    %23 = arith.addf %20, %22 : vector<128x128xf32>
    %cst_12 = arith.constant 0.000000e+00 : f32
    %24 = vector.broadcast %cst_12 : f32 to vector<128x128xf32>
    %25 = arith.maximumf %23, %24 : vector<128x128xf32>
    %c0_13 = arith.constant 0 : index
    %c0_14 = arith.constant 0 : index
    %26 = vector.load %arg7[%c0_13, %c0_14] : memref<128x128xf32, #tpu.memory_space<vmem>>, vector<128x128xf32>
    tpu.vector_store %arg7[%c0_13, %c0_14], %25 {strides = array<i32>} : memref<128x128xf32, #tpu.memory_space<vmem>>, vector<128x128xf32>,
    return
  }
  func.func @transform_0(%arg0: i32, %arg1: i32) -> (i32, i32) {
    %c0_i32 = arith.constant 0 : i32
    return %arg1, %arg0 : i32, i32
  }
  func.func @transform_1(%arg0: i32, %arg1: i32) -> (i32, i32) {
    %c0_i32 = arith.constant 0 : i32
    %c0_i32_0 = arith.constant 0 : i32
    return %c0_i32, %arg0 : i32, i32
  }
  func.func @transform_2(%arg0: i32, %arg1: i32) -> (i32, i32) {
    %c0_i32 = arith.constant 0 : i32
    %c0_i32_0 = arith.constant 0 : i32
    return %c0_i32, %arg0 : i32, i32
  }
  func.func @transform_3(%arg0: i32, %arg1: i32) -> (i32, i32) {
    %c0_i32 = arith.constant 0 : i32
    %c0_i32_0 = arith.constant 0 : i32
    return %c0_i32, %arg0 : i32, i32
  }
  func.func @transform_4(%arg0: i32, %arg1: i32) -> (i32, i32) {
    %c0_i32 = arith.constant 0 : i32
    %c0_i32_0 = arith.constant 0 : i32
    return %c0_i32, %arg0 : i32, i32
  }
  func.func @transform_5(%arg0: i32, %arg1: i32) -> (i32, i32) {
    %c0_i32 = arith.constant 0 : i32
    return %arg1, %arg0 : i32, i32
  }
}

</mosaic_0001>

<bundles_post_ra>
// kernel: conv_bn_relu_forward.3
= control target key start
LH: loop header
LB: loop body
LE: loop exit
PB: predicated region body
PF: predicated region fallthrough
CT: control target
= control target key end

     0   :  { %s682_s18 = smov 0   ;;  %s684_s19 = smov 0   ;;  %s800_s0 = inlined_call_operand.vmem [shape: f32[512,128], index: 0, kind: input, shape index: {}]   ;;  %s801_s1 = inlined_call_operand.vmem [shape: f32[1,128], index: 1, kind: input, shape index: {}]   ;;  %s802_s2 = inlined_call_operand.vmem [shape: f32[1,128], index: 2, kind: input, shape index: {}]   ;;  %s803_s3 = inlined_call_operand.vmem [shape: f32[1,128], index: 3, kind: input, shape index: {}]   ;;  %s804_s4 = inlined_call_operand.vmem [shape: f32[1,128], index: 4, kind: input, shape index: {}]   ;;  %s805_s5 = inlined_call_operand.vmem [shape: f32[512,128], index: 5, kind: output, shape index: {}]  }
   0x1   :  { %s686_s20 = smov 0  }
   0x2 LB: > { %s24_s21 = sadd.s32 1, %s646_s19  ;;  %p593_p0 = scmp.ge.s32.totalorder %s650_s20, 1  ;;  %s650_s20 = sphi %s686_s20, %s15_s20   ;;  %s646_s19 = sphi %s684_s19, %s809_s19   ;;  %s642_s18 = sphi %s682_s18, %s808_s18  }
   0x3   : > { %p25_p1 = scmp.ge.s32.totalorder %s24_s21, 4  ;;  %p239_p2 = scmp.lt.s32.totalorder %s650_s20, 5 }
   0x5   : > { %s811_s21 = smov (%p25_p1, %s24_s21), 0  ;;  %p240_p3 = pnand %p593_p0, %p239_p2 }
   0x6   : > { %s594_s26 = sshll.u32 (!%p240_p3), %s642_s18, 4 }
   0x7   : > { %243 = sbr.rel (%p240_p3) target bundleno = 67 (0x43), region = 40  ;;  %p286_p4 = scmp.lt.s32.totalorder (!%p240_p3), %s594_s26, 63 }
   0xc   : > { %v331_v0 = vld [vmem:[%s801_s1] sm:$0x1]  ;;  %s813_s26 = smov (!%p286_p4, %s594_s26), 63 }
   0xd   : > { %v333_v1 = vld [vmem:[%s802_s2] sm:$0x1]  ;;  %v332_v2 = vmul.f32 0.001953125, %v331_v0  ;;  %s595_s27 = sshll.u32 %s813_s26, 3 }
   0xe   : > { %v334_v3 = vmul.f32 0.001953125, %v333_v1  ;;  %s292_s30 = scalar_lea.vmem %s800_s0, %s595_s27  ;;  %v624_v43 = vld [vmem:[%s803_s3] ss:$0 sm:$0xff]  ;;  %s761_s12 = scalar_lea.vmem %s805_s5, %s595_s27 }
   0xf   : > { %v335_v4 = vmul.f32 %v332_v2, %v332_v2  ;;  %v315_v11 = vld [vmem:[%s292_s30] sm:$0xff]  ;;  %v714_v12 = vperm.slane %v332_v2, 0  ;;  %v316_v14 = vld [vmem:[%s292_s30 + $0x8] sm:$0xff]  ;;  %v317_v15 = vld [vmem:[%s292_s30 + $0x10] sm:$0xff] }
  0x10   : > { %v318_v16 = vld [vmem:[%s292_s30 + $0x18] sm:$0xff]  ;;  %v319_v17 = vld [vmem:[%s292_s30 + $0x20] sm:$0xff]  ;;  %v320_v19 = vld [vmem:[%s292_s30 + $0x28] sm:$0xff] }
  0x11   : > { %v336_v5 = vsub.f32 %v334_v3, %v335_v4  ;;  %v321_v20 = vld [vmem:[%s292_s30 + $0x30] sm:$0xff]  ;;  %v322_v21 = vld [vmem:[%s292_s30 + $0x38] sm:$0xff]  ;;  %v720_v23 = vld [vmem:[%s292_s30 + $0x40] sm:$0xff]  ;;  %v341_v25 = vsub.f32 %v315_v11, %v714_v12  ;;  %v342_v27 = vsub.f32 %v316_v14, %v714_v12  ;;  %v343_v31 = vsub.f32 %v317_v15, %v714_v12 }
  0x12   : > { %v722_v24 = vld [vmem:[%s292_s30 + $0x48] sm:$0xff]  ;;  %v325_v28 = vld [vmem:[%s292_s30 + $0x50] sm:$0xff]  ;;  %v326_v29 = vld [vmem:[%s292_s30 + $0x58] sm:$0xff]  ;;  %v344_v32 = vsub.f32 %v318_v16, %v714_v12  ;;  %v345_v33 = vsub.f32 %v319_v17, %v714_v12  ;;  %v346_v34 = vsub.f32 %v320_v19, %v714_v12  ;;  %v347_v39 = vsub.f32 %v321_v20, %v714_v12 }
  0x13   : > { %v337_v6 = vmax.f32 %v336_v5, 0.0  ;;  %v327_v30 = vld [vmem:[%s292_s30 + $0x60] sm:$0xff]  ;;  %v328_v35 = vld [vmem:[%s292_s30 + $0x68] sm:$0xff]  ;;  %v329_v36 = vld [vmem:[%s292_s30 + $0x70] sm:$0xff]  ;;  %v348_v40 = vsub.f32 %v322_v21, %v714_v12  ;;  %v349_v41 = vsub.f32 %v720_v23, %v714_v12  ;;  %v350_v44 = vsub.f32 %v722_v24, %v714_v12 }
  0x14   : > { %v330_v37 = vld [vmem:[%s292_s30 + $0x78] sm:$0xff]  ;;  %v351_v45 = vsub.f32 %v325_v28, %v714_v12  ;;  %v352_v46 = vsub.f32 %v326_v29, %v714_v12  ;;  %v353_v47 = vsub.f32 %v327_v30, %v714_v12  ;;  %v354_v48 = vsub.f32 %v328_v35, %v714_v12  ;;  %v750_v52 = vld [vmem:[%s804_s4] ss:$0 sm:$0xff] }
  0x15   : > { %v357_v7 = vadd.f32 1e-05, %v337_v6  ;;  %v355_v49 = vsub.f32 %v329_v36, %v714_v12  ;;  %v356_v50 = vsub.f32 %v330_v37, %v714_v12 }
  0x17   : > { %626 = vrsqrt.f32 %v357_v7  ;;  %vm364_vm0 = vweird.f32 %v357_v7 }
  0x1d   : > { %v627_v8 = vpop.eup %626 }
  0x1e   : > { %v359_v9 = vmul.f32 %v627_v8, %v357_v7  ;;  %vm365_vm1 = vweird.f32 %v627_v8 }
  0x1f   : > { %vm716_vm2 = vmor %vm364_vm0, %vm365_vm1 }
  0x20   : > { %v360_v10 = vmul.f32 %v627_v8, %v359_v9 }
  0x22   : > { %v361_v13 = vmul.f32 0.5, %v360_v10 }
  0x24   : > { %v362_v18 = vsub.f32 1.5, %v361_v13 }
  0x26   : > { %v363_v26 = vmul.f32 %v627_v8, %v362_v18 }
  0x28   : > { %v367_v38 = vsel %vm716_vm2, %v627_v8, %v363_v26 }
  0x29   : > { %v369_v42 = vperm.slane %v367_v38, 0 }
  0x2b   : > { %v371_v51 = vmul.f32 %v369_v42, %v341_v25  ;;  %v372_v53 = vmul.f32 %v369_v42, %v342_v27  ;;  %v373_v54 = vmul.f32 %v369_v42, %v343_v31  ;;  %v374_v55 = vmul.f32 %v369_v42, %v344_v32 }
  0x2c   : > { %v375_v56 = vmul.f32 %v369_v42, %v345_v33  ;;  %v376_v57 = vmul.f32 %v369_v42, %v346_v34  ;;  %v377_v58 = vmul.f32 %v369_v42, %v347_v39  ;;  %v378_v59 = vmul.f32 %v369_v42, %v348_v40 }
  0x2d   : > { %v391_v60 = vmul.f32 %v624_v43, %v371_v51  ;;  %v392_v61 = vmul.f32 %v624_v43, %v372_v53  ;;  %v393_v62 = vmul.f32 %v624_v43, %v373_v54  ;;  %v394_v63 = vmul.f32 %v624_v43, %v374_v55 }
  0x2e   : > { %v395_v0 = vmul.f32 %v624_v43, %v375_v56  ;;  %v396_v1 = vmul.f32 %v624_v43, %v376_v57  ;;  %v397_v2 = vmul.f32 %v624_v43, %v377_v58  ;;  %v398_v3 = vmul.f32 %v624_v43, %v378_v59 }
  0x2f   : > { %v411_v4 = vadd.f32 %v750_v52, %v391_v60  ;;  %v412_v5 = vadd.f32 %v750_v52, %v392_v61  ;;  %v413_v6 = vadd.f32 %v750_v52, %v393_v62  ;;  %v414_v7 = vadd.f32 %v750_v52, %v394_v63 }
  0x30   : > { %v415_v8 = vadd.f32 %v750_v52, %v395_v0  ;;  %v416_v9 = vadd.f32 %v750_v52, %v396_v1  ;;  %v417_v10 = vadd.f32 %v750_v52, %v397_v2  ;;  %v418_v11 = vadd.f32 %v750_v52, %v398_v3 }
  0x31   : > { %v427_v12 = vmax.f32 %v411_v4, 0.0  ;;  %v428_v13 = vmax.f32 %v412_v5, 0.0  ;;  %v429_v14 = vmax.f32 %v413_v6, 0.0  ;;  %v430_v15 = vmax.f32 %v414_v7, 0.0 }
  0x32   : > { %v431_v16 = vmax.f32 %v415_v8, 0.0  ;;  %v432_v17 = vmax.f32 %v416_v9, 0.0  ;;  %v433_v18 = vmax.f32 %v417_v10, 0.0  ;;  %v434_v19 = vmax.f32 %v418_v11, 0.0 }
  0x33   : > { %443 = vst [vmem:[%s761_s12] sm:$0xff] %v427_v12  ;;  %v379_v20 = vmul.f32 %v369_v42, %v349_v41  ;;  %v380_v21 = vmul.f32 %v369_v42, %v350_v44  ;;  %v381_v22 = vmul.f32 %v369_v42, %v351_v45  ;;  %v382_v23 = vmul.f32 %v369_v42, %v352_v46 }
  0x34   : > { %444 = vst [vmem:[%s761_s12 + $0x8] sm:$0xff] %v428_v13  ;;  %v383_v24 = vmul.f32 %v369_v42, %v353_v47  ;;  %v384_v25 = vmul.f32 %v369_v42, %v354_v48  ;;  %v385_v26 = vmul.f32 %v369_v42, %v355_v49  ;;  %v386_v27 = vmul.f32 %v369_v42, %v356_v50 }
  0x35   : > { %445 = vst [vmem:[%s761_s12 + $0x10] sm:$0xff] %v429_v14  ;;  %v399_v28 = vmul.f32 %v624_v43, %v379_v20  ;;  %v400_v29 = vmul.f32 %v624_v43, %v380_v21  ;;  %v401_v30 = vmul.f32 %v624_v43, %v381_v22  ;;  %v402_v31 = vmul.f32 %v624_v43, %v382_v23 }
  0x36   : > { %446 = vst [vmem:[%s761_s12 + $0x18] sm:$0xff] %v430_v15  ;;  %v403_v32 = vmul.f32 %v624_v43, %v383_v24  ;;  %v404_v33 = vmul.f32 %v624_v43, %v384_v25  ;;  %v405_v34 = vmul.f32 %v624_v43, %v385_v26  ;;  %v406_v35 = vmul.f32 %v624_v43, %v386_v27 }
  0x37   : > { %447 = vst [vmem:[%s761_s12 + $0x20] sm:$0xff] %v431_v16  ;;  %v419_v36 = vadd.f32 %v750_v52, %v399_v28  ;;  %v420_v37 = vadd.f32 %v750_v52, %v400_v29  ;;  %v421_v38 = vadd.f32 %v750_v52, %v401_v30  ;;  %v422_v39 = vadd.f32 %v750_v52, %v402_v31 }
  0x38   : > { %448 = vst [vmem:[%s761_s12 + $0x28] sm:$0xff] %v432_v17  ;;  %v423_v40 = vadd.f32 %v750_v52, %v403_v32  ;;  %v424_v41 = vadd.f32 %v750_v52, %v404_v33  ;;  %v425_v45 = vadd.f32 %v750_v52, %v405_v34  ;;  %v426_v47 = vadd.f32 %v750_v52, %v406_v35 }
  0x39   : > { %449 = vst [vmem:[%s761_s12 + $0x30] sm:$0xff] %v433_v18  ;;  %v435_v42 = vmax.f32 %v419_v36, 0.0  ;;  %v436_v43 = vmax.f32 %v420_v37, 0.0  ;;  %v437_v44 = vmax.f32 %v421_v38, 0.0  ;;  %v438_v46 = vmax.f32 %v422_v39, 0.0 }
  0x3a   : > { %450 = vst [vmem:[%s761_s12 + $0x38] sm:$0xff] %v434_v19  ;;  %v439_v48 = vmax.f32 %v423_v40, 0.0  ;;  %v440_v49 = vmax.f32 %v424_v41, 0.0  ;;  %v441_v50 = vmax.f32 %v425_v45, 0.0  ;;  %v442_v51 = vmax.f32 %v426_v47, 0.0 }
  0x3b   : > { %451 = vst [vmem:[%s761_s12 + $0x40] sm:$0xff] %v435_v42 }
  0x3c   : > { %452 = vst [vmem:[%s761_s12 + $0x48] sm:$0xff] %v436_v43 }
  0x3d   : > { %453 = vst [vmem:[%s761_s12 + $0x50] sm:$0xff] %v437_v44 }
  0x3e   : > { %454 = vst [vmem:[%s761_s12 + $0x58] sm:$0xff] %v438_v46 }
  0x3f   : > { %455 = vst [vmem:[%s761_s12 + $0x60] sm:$0xff] %v439_v48 }
  0x40   : > { %456 = vst [vmem:[%s761_s12 + $0x68] sm:$0xff] %v440_v49 }
  0x41   : > { %457 = vst [vmem:[%s761_s12 + $0x70] sm:$0xff] %v441_v50 }
  0x42   : > { %458 = vst [vmem:[%s761_s12 + $0x78] sm:$0xff] %v442_v51 }
  0x43 PF: > { %s15_s20 = sadd.s32 1, %s650_s20   ;;  %s808_s18 = smov %s646_s19 }
  0x44   : > { %p12_p5 = scmp.ge.s32.totalorder %s15_s20, 6   ;;  %s809_s19 = smov %s811_s21 }
  0x46   :  { %14 = sbr.rel (!%p12_p5) target bundleno = 2 (0x2), region = 82 }

// kernel: conv_bn_relu_forward.2
= control target key start
LH: loop header
LB: loop body
LE: loop exit
PB: predicated region body
PF: predicated region fallthrough
CT: control target
= control target key end

     0   :  { %s979_s15 = smov 0   ;;  %s981_s16 = smov 0   ;;  %s1082_s0 = inlined_call_operand.vmem [shape: bf16[512,128], index: 0, kind: input, shape index: {}]   ;;  %s1083_s1 = inlined_call_operand.vmem [shape: bf16[128,128], index: 1, kind: input, shape index: {}]   ;;  %s1084_s2 = inlined_call_operand.vmem [shape: f32[512,128], index: 2, kind: output, shape index: {0}]   ;;  %s1085_s3 = inlined_call_operand.vmem [shape: f32[1,128], index: 3, kind: output, shape index: {1}]   ;;  %s1086_s4 = inlined_call_operand.vmem [shape: f32[1,128], index: 4, kind: output, shape index: {2}]  }
   0x1   :  { %s983_s17 = smov 0  }
   0x2 LB: > { %s30_s18 = sadd.s32 1, %s947_s16  ;;  %p788_p0 = scmp.ge.s32.totalorder %s951_s17, 1  ;;  %s951_s17 = sphi %s983_s17, %s15_s17   ;;  %s947_s16 = sphi %s981_s16, %s1088_s16   ;;  %s943_s15 = sphi %s979_s15, %s1087_s15  }
   0x3   : > { %p32_p1 = scmp.ge.s32.totalorder %s30_s18, 4  ;;  %p210_p2 = scmp.lt.s32.totalorder %s951_s17, 5 }
   0x5   : > { %s1090_s18 = smov (%p32_p1, %s30_s18), 0  ;;  %p211_p3 = pnand %p788_p0, %p210_p2 }
   0x6   : > { %s789_s21 = sshll.u32 (!%p211_p3), %s943_s15, 4  ;;  %p534_p5 = scmp.eq.s32.totalorder (!%p211_p3), %s943_s15, 0 }
   0x7   : > { %214 = sbr.rel (%p211_p3) target bundleno = 251 (0xfb), region = 28  ;;  %p257_p4 = scmp.lt.s32.totalorder (!%p211_p3), %s789_s21, 63 }
   0xc   : > { %v877_v0 = vld [vmem:[%s1083_s1 + $0x38] sm:$0xff]  ;;  %v876_v1 = vld [vmem:[%s1083_s1 + $0x30] sm:$0xff]  ;;  %s1092_s21 = smov (!%p257_p4, %s789_s21), 63  ;;  %v875_v2 = vld [vmem:[%s1083_s1 + $0x28] sm:$0xff]  ;;  %v953_v32 = vmov (%p534_p5), 0.0  }
   0xd   : > { %453 = vmatpush.bf16.msra.mxu0 %v877_v0  ;;  %879 = vmatpush.bf16.msra.mxu1 %v877_v0  ;;  %s792_s24 = sshll.u32 %s1092_s21, 3  ;;  %v874_v3 = vld [vmem:[%s1083_s1 + $0x20] sm:$0xff]  ;;  %v873_v4 = vld [vmem:[%s1083_s1 + $0x18] sm:$0xff]  ;;  %v872_v5 = vld [vmem:[%s1083_s1 + $0x10] sm:$0xff]  ;;  %s790_s12 = sshll.u32 %s1092_s21, 2  ;;  %539 = vst [vmem:[%s1085_s3] sm:$0x1] (%p534_p5), %v953_v32 }
   0xe   : > { %880 = vmatpush.bf16.msra.mxu2 %v877_v0  ;;  %881 = vmatpush.bf16.msra.mxu3 %v877_v0  ;;  %s1015_s29 = scalar_lea.vmem %s1084_s2, %s792_s24  ;;  %v871_v6 = vld [vmem:[%s1083_s1 + $0x8] sm:$0xff]  ;;  %v870_v7 = vld [vmem:[%s1083_s1] sm:$0xff]  ;;  %s263_s22 = scalar_lea.vmem %s1082_s0, %s790_s12  ;;  %540 = vst [vmem:[%s1086_s4] sm:$0x1] (%p534_p5), %v953_v32 }
   0xf   : > { %v862_v8 = vld [vmem:[%s263_s22] sm:$0xff]  ;;  %v864_v9 = vld [vmem:[%s263_s22 + $0x10] sm:$0xff]  ;;  %v863_v12 = vld [vmem:[%s263_s22 + $0x8] sm:$0xff] }
  0x10   : > { %v866_v10 = vld [vmem:[%s263_s22 + $0x20] sm:$0xff]  ;;  %v868_v11 = vld [vmem:[%s263_s22 + $0x30] sm:$0xff]  ;;  %v865_v13 = vld [vmem:[%s263_s22 + $0x18] sm:$0xff] }
  0x11   : > { %454 = vmatpush.bf16.msra.mxu0 %v876_v1  ;;  %882 = vmatpush.bf16.msra.mxu1 %v876_v1  ;;  %v867_v14 = vld [vmem:[%s263_s22 + $0x28] sm:$0xff]  ;;  %v869_v15 = vld [vmem:[%s263_s22 + $0x38] sm:$0xff] }
  0x12   : > { %883 = vmatpush.bf16.msra.mxu2 %v876_v1  ;;  %884 = vmatpush.bf16.msra.mxu3 %v876_v1 }
  0x15   : > { %455 = vmatpush.bf16.msra.mxu0 %v875_v2  ;;  %885 = vmatpush.bf16.msra.mxu1 %v875_v2 }
  0x16   : > { %886 = vmatpush.bf16.msra.mxu2 %v875_v2  ;;  %887 = vmatpush.bf16.msra.mxu3 %v875_v2 }
  0x19   : > { %456 = vmatpush.bf16.msra.mxu0 %v874_v3  ;;  %888 = vmatpush.bf16.msra.mxu1 %v874_v3 }
  0x1a   : > { %889 = vmatpush.bf16.msra.mxu2 %v874_v3  ;;  %890 = vmatpush.bf16.msra.mxu3 %v874_v3 }
  0x1d   : > { %457 = vmatpush.bf16.msra.mxu0 %v873_v4  ;;  %891 = vmatpush.bf16.msra.mxu1 %v873_v4 }
  0x1e   : > { %892 = vmatpush.bf16.msra.mxu2 %v873_v4  ;;  %893 = vmatpush.bf16.msra.mxu3 %v873_v4 }
  0x21   : > { %458 = vmatpush.bf16.msra.mxu0 %v872_v5  ;;  %894 = vmatpush.bf16.msra.mxu1 %v872_v5 }
  0x22   : > { %895 = vmatpush.bf16.msra.mxu2 %v872_v5  ;;  %896 = vmatpush.bf16.msra.mxu3 %v872_v5 }
  0x25   : > { %459 = vmatpush.bf16.msra.mxu0 %v871_v6  ;;  %897 = vmatpush.bf16.msra.mxu1 %v871_v6 }
  0x26   : > { %898 = vmatpush.bf16.msra.mxu2 %v871_v6  ;;  %899 = vmatpush.bf16.msra.mxu3 %v871_v6 }
  0x29   : > { %460 = vmatpush.bf16.msra.mxu0 %v870_v7  ;;  %900 = vmatpush.bf16.msra.mxu1 %v870_v7 }
  0x2a   : > { %901 = vmatpush.bf16.msra.mxu2 %v870_v7  ;;  %902 = vmatpush.bf16.msra.mxu3 %v870_v7 }
  0x2c   : > { %461 = vmatmul.bf16.vlgmr.msra.gmra.mxu0 %v862_v8  ;;  %471 = vmatmul.bf16.vlgmr.msra.gmra.mxu1 %v864_v9 }
  0x2d   : > { %481 = vmatmul.bf16.vlgmr.msra.gmra.mxu2 %v866_v10  ;;  %491 = vmatmul.bf16.vlgmr.msra.gmra.mxu3 %v868_v11 }
  0x3c   : > { %466 = vmatmul.bf16.gmra.mxu0 %v863_v12  ;;  %476 = vmatmul.bf16.gmra.mxu1 %v865_v13 }
  0x3d   : > { %486 = vmatmul.bf16.gmra.mxu2 %v867_v14  ;;  %496 = vmatmul.bf16.gmra.mxu3 %v869_v15 }
  0xa9   : > { %v462_v16 = vpop.f32.mrf.mxu0  ;;  %v472_v17 = vpop.f32.mrf.mxu1 }
  0xaa   : > { %518 = vst [vmem:[#allocation2 + $0x30] sm:$0xff] %v462_v16 }
  0xab   : > { %522 = vst [vmem:[#allocation2 + $0x50] sm:$0xff] %v472_v17 }
  0xb0   : > { %v482_v18 = vpop.f32.mrf.mxu2  ;;  %v492_v19 = vpop.f32.mrf.mxu3 }
  0xb1   : > { %v464_v20 = vpop.f32.mrf.mxu0  ;;  %v474_v21 = vpop.f32.mrf.mxu1  ;;  %526 = vst [vmem:[#allocation2 + $0x40] sm:$0xff] %v482_v18 }
  0xb2   : > { %530 = vst [vmem:[#allocation2 + $0x60] sm:$0xff] %v492_v19 }
  0xb3   : > { %519 = vst [vmem:[#allocation2] sm:$0xff] %v464_v20 }
  0xb4   : > { %523 = vst [vmem:[#allocation2 + $0x68] sm:$0xff] %v474_v21 }
  0xb8   : > { %v484_v22 = vpop.f32.mrf.mxu2  ;;  %v494_v23 = vpop.f32.mrf.mxu3 }
  0xb9   : > { %v467_v24 = vpop.f32.mrf.mxu0  ;;  %v477_v25 = vpop.f32.mrf.mxu1  ;;  %527 = vst [vmem:[#allocation2 + $0x20] sm:$0xff] %v484_v22 }
  0xba   : > { %531 = vst [vmem:[#allocation2 + $0x70] sm:$0xff] %v494_v23 }
  0xbb   : > { %520 = vst [vmem:[#allocation2 + $0x58] sm:$0xff] %v467_v24 }
  0xbc   : > { %524 = vst [vmem:[#allocation2 + $0x8] sm:$0xff] %v477_v25 }
  0xc0   : > { %v487_v26 = vpop.f32.mrf.mxu2  ;;  %v497_v27 = vpop.f32.mrf.mxu3 }
  0xc1   : > { %v469_v28 = vpop.f32.mrf.mxu0  ;;  %v479_v29 = vpop.f32.mrf.mxu1  ;;  %528 = vst [vmem:[#allocation2 + $0x10] sm:$0xff] %v487_v26 }
  0xc2   : > { %532 = vst [vmem:[#allocation2 + $0x78] sm:$0xff] %v497_v27 }
  0xc3   : > { %521 = vst [vmem:[#allocation2 + $0x18] sm:$0xff] %v469_v28 }
  0xc4   : > { %525 = vst [vmem:[#allocation2 + $0x48] sm:$0xff] %v479_v29 }
  0xc6   : > { %538 = sbr.rel (!%p534_p5) target bundleno = 203 (0xcb), region = 36 }
  0xc8   : > { %v489_v30 = vpop.f32.mrf.mxu2  ;;  %v499_v31 = vpop.f32.mrf.mxu3 }
  0xc9   : > { %529 = vst [vmem:[#allocation2 + $0x38] sm:$0xff] %v489_v30 }
  0xca   : > { %533 = vst [vmem:[#allocation2 + $0x28] sm:$0xff] %v499_v31 }
  0xcb PF: > { %v544_v33 = vld [vmem:[#allocation2 + $0x30] sm:$0xff]  ;;  %v545_v34 = vld [vmem:[#allocation2] sm:$0xff]  ;;  %v546_v35 = vld [vmem:[#allocation2 + $0x58] sm:$0xff] }
  0xcc   : > { %560 = vst [vmem:[%s1015_s29] sm:$0xff] %v544_v33  ;;  %v601_v36 = vmul.f32 %v544_v33, %v544_v33  ;;  %v577_v37 = vadd.f32 %v545_v34, %v544_v33  ;;  %v602_v38 = vmul.f32 %v545_v34, %v545_v34  ;;  %v603_v39 = vmul.f32 %v546_v35, %v546_v35  ;;  %v547_v40 = vld [vmem:[#allocation2 + $0x18] sm:$0xff]  ;;  %v548_v41 = vld [vmem:[#allocation2 + $0x50] sm:$0xff]  ;;  %v549_v45 = vld [vmem:[#allocation2 + $0x68] sm:$0xff] }
  0xcd   : > { %561 = vst [vmem:[%s1015_s29 + $0x8] sm:$0xff] %v545_v34  ;;  %v604_v44 = vmul.f32 %v547_v40, %v547_v40  ;;  %v605_v48 = vmul.f32 %v548_v41, %v548_v41  ;;  %v550_v49 = vld [vmem:[#allocation2 + $0x8] sm:$0xff]  ;;  %v606_v52 = vmul.f32 %v549_v45, %v549_v45  ;;  %v552_v54 = vld [vmem:[#allocation2 + $0x40] sm:$0xff]  ;;  %v554_v59 = vld [vmem:[#allocation2 + $0x10] sm:$0xff] }
  0xce   : > { %v617_v42 = vadd.f32 %v602_v38, %v601_v36  ;;  %562 = vst [vmem:[%s1015_s29 + $0x10] sm:$0xff] %v546_v35  ;;  %v578_v43 = vadd.f32 %v577_v37, %v546_v35  ;;  %v551_v53 = vld [vmem:[#allocation2 + $0x48] sm:$0xff]  ;;  %v607_v57 = vmul.f32 %v550_v49, %v550_v49  ;;  %v553_v58 = vld [vmem:[#allocation2 + $0x20] sm:$0xff]  ;;  %v609_v3 = vmul.f32 %v552_v54, %v552_v54  ;;  %v557_v4 = vld [vmem:[#allocation2 + $0x70] sm:$0xff] }
  0xcf   : > { %563 = vst [vmem:[%s1015_s29 + $0x18] sm:$0xff] %v547_v40  ;;  %v608_v62 = vmul.f32 %v551_v53, %v551_v53  ;;  %v556_v0 = vld [vmem:[#allocation2 + $0x60] sm:$0xff]  ;;  %v558_v5 = vld [vmem:[#allocation2 + $0x78] sm:$0xff]  ;;  %v610_v8 = vmul.f32 %v553_v58, %v553_v58  ;;  %v611_v12 = vmul.f32 %v554_v59, %v554_v59  ;;  %v614_v21 = vmul.f32 %v557_v4, %v557_v4 }
  0xd0   : > { %v618_v46 = vadd.f32 %v617_v42, %v603_v39  ;;  %v579_v47 = vadd.f32 %v578_v43, %v547_v40  ;;  %564 = vst [vmem:[%s1015_s29 + $0x20] sm:$0xff] %v548_v41  ;;  %v555_v63 = vld [vmem:[#allocation2 + $0x38] sm:$0xff]  ;;  %v613_v18 = vmul.f32 %v556_v0, %v556_v0  ;;  %v615_v24 = vmul.f32 %v558_v5, %v558_v5  ;;  %v576_v40 = vld [vmem:[%s1085_s3] sm:$0x1] }
  0xd1   : > { %565 = vst [vmem:[%s1015_s29 + $0x28] sm:$0xff] %v549_v45  ;;  %v559_v9 = vld [vmem:[#allocation2 + $0x28] sm:$0xff]  ;;  %v612_v15 = vmul.f32 %v555_v63, %v555_v63  ;;  %v600_v43 = vld [vmem:[%s1086_s4] sm:$0x1] }
  0xd2   : > { %v619_v50 = vadd.f32 %v618_v46, %v604_v44  ;;  %v580_v51 = vadd.f32 %v579_v47, %v548_v41  ;;  %566 = vst [vmem:[%s1015_s29 + $0x30] sm:$0xff] %v550_v49  ;;  %v616_v27 = vmul.f32 %v559_v9, %v559_v9 }
  0xd3   : > { %567 = vst [vmem:[%s1015_s29 + $0x38] sm:$0xff] %v551_v53 }
  0xd4   : > { %v620_v55 = vadd.f32 %v619_v50, %v605_v48  ;;  %v581_v56 = vadd.f32 %v580_v51, %v549_v45  ;;  %568 = vst [vmem:[%s1015_s29 + $0x40] sm:$0xff] %v552_v54 }
  0xd5   : > { %569 = vst [vmem:[%s1015_s29 + $0x48] sm:$0xff] %v553_v58 }
  0xd6   : > { %v621_v60 = vadd.f32 %v620_v55, %v606_v52  ;;  %v582_v61 = vadd.f32 %v581_v56, %v550_v49  ;;  %570 = vst [vmem:[%s1015_s29 + $0x50] sm:$0xff] %v554_v59 }
  0xd7   : > { %571 = vst [vmem:[%s1015_s29 + $0x58] sm:$0xff] %v555_v63 }
  0xd8   : > { %v622_v1 = vadd.f32 %v621_v60, %v607_v57  ;;  %v583_v2 = vadd.f32 %v582_v61, %v551_v53  ;;  %572 = vst [vmem:[%s1015_s29 + $0x60] sm:$0xff] %v556_v0 }
  0xd9   : > { %573 = vst [vmem:[%s1015_s29 + $0x68] sm:$0xff] %v557_v4 }
  0xda   : > { %v623_v6 = vadd.f32 %v622_v1, %v608_v62  ;;  %v584_v7 = vadd.f32 %v583_v2, %v552_v54  ;;  %574 = vst [vmem:[%s1015_s29 + $0x70] sm:$0xff] %v558_v5 }
  0xdb   : > { %575 = vst [vmem:[%s1015_s29 + $0x78] sm:$0xff] %v559_v9 }
  0xdc   : > { %v624_v10 = vadd.f32 %v623_v6, %v609_v3  ;;  %v585_v11 = vadd.f32 %v584_v7, %v553_v58 }
  0xde   : > { %v625_v13 = vadd.f32 %v624_v10, %v610_v8  ;;  %v586_v14 = vadd.f32 %v585_v11, %v554_v59 }
  0xe0   : > { %v626_v16 = vadd.f32 %v625_v13, %v611_v12  ;;  %v587_v17 = vadd.f32 %v586_v14, %v555_v63 }
  0xe2   : > { %v627_v19 = vadd.f32 %v626_v16, %v612_v15  ;;  %v588_v20 = vadd.f32 %v587_v17, %v556_v0 }
  0xe4   : > { %v628_v22 = vadd.f32 %v627_v19, %v613_v18  ;;  %v589_v23 = vadd.f32 %v588_v20, %v557_v4 }
  0xe6   : > { %v629_v25 = vadd.f32 %v628_v22, %v614_v21  ;;  %v590_v26 = vadd.f32 %v589_v23, %v558_v5 }
  0xe8   : > { %v630_v28 = vadd.f32 %v629_v25, %v615_v24  ;;  %v591_v29 = vadd.f32 %v590_v26, %v559_v9 }
  0xea   : > { %v592_v30 = vrot.slane %v591_v29, 4  ;;  %v631_v31 = vadd.f32 %v630_v28, %v616_v27 }
  0xec   : > { %v593_v32 = vadd.f32 %v592_v30, %v591_v29  ;;  %v632_v33 = vrot.slane %v631_v31, 4 }
  0xee   : > { %v594_v34 = vrot.slane %v593_v32, 2  ;;  %v633_v35 = vadd.f32 %v632_v33, %v631_v31 }
  0xf0   : > { %v595_v36 = vadd.f32 %v594_v34, %v593_v32  ;;  %v634_v37 = vrot.slane %v633_v35, 2 }
  0xf2   : > { %v596_v38 = vrot.slane %v595_v36, 1  ;;  %v635_v39 = vadd.f32 %v634_v37, %v633_v35 }
  0xf4   : > { %v597_v41 = vadd.f32 %v596_v38, %v595_v36  ;;  %v636_v42 = vrot.slane %v635_v39, 1 }
  0xf6   : > { %v598_v44 = vadd.f32 %v597_v41, %v576_v40  ;;  %v637_v45 = vadd.f32 %v636_v42, %v635_v39 }
  0xf8   : > { %599 = vst [vmem:[%s1085_s3] sm:$0x1] %v598_v44  ;;  %v638_v46 = vadd.f32 %v637_v45, %v600_v43 }
  0xfa   : > { %639 = vst [vmem:[%s1086_s4] sm:$0x1] %v638_v46 }
  0xfb PF: > { %s15_s17 = sadd.s32 1, %s951_s17   ;;  %s1087_s15 = smov %s947_s16 }
  0xfc   : > { %p12_p6 = scmp.ge.s32.totalorder %s15_s17, 6   ;;  %s1088_s16 = smov %s1090_s18 }
  0xfe   :  { %14 = sbr.rel (!%p12_p6) target bundleno = 2 (0x2), region = 97 }

</bundles_post_ra>
